<compile_context>
chip_gen: v6e
topology: v6e:2x2x1
jax: 0.10.0
libtpu: 0.0.40
codegen_flags: <defaults>
</compile_context>

<pallas_src>
import functools

import jax
import jax.numpy as jnp
from jax import lax
from jax.experimental import pallas as pl
from jax.experimental.pallas import tpu as pltpu


def _contrastive_partial_kernel(a_ref, b_ref, lbl_ref, out_ref, *,
                                margin, tile_b, rows_in_last, need_mask):
    # a_ref, b_ref: (TB, D) embedding tiles in VMEM (native dtype, e.g. bf16/f32)
    # lbl_ref:      (TB, 1) float32 labels in VMEM
    # out_ref:      (1, 8, 128) float32, per-tile partial sum broadcast to the block
    a = a_ref[...].astype(jnp.float32)
    b = b_ref[...].astype(jnp.float32)
    lbl = lbl_ref[...].astype(jnp.float32)                     # (TB, 1)

    # Row reductions on the (idle) MXU: elementwise products on the VPU, then
    # a matmul against a ones column. precision=HIGHEST keeps f32 accuracy.
    d = a.shape[-1]
    ones_col = jnp.ones((d, 1), jnp.float32)
    hi = lax.Precision.HIGHEST
    dot = jnp.dot(a * b, ones_col, precision=hi, preferred_element_type=jnp.float32)
    na2 = jnp.dot(a * a, ones_col, precision=hi, preferred_element_type=jnp.float32)
    nb2 = jnp.dot(b * b, ones_col, precision=hi, preferred_element_type=jnp.float32)

    # cosine similarity (torch F.cosine_similarity, dim=1, eps=1e-8):
    #   cos = dot / (max(||a||, eps) * max(||b||, eps))
    # implemented with squared norms + rsqrt (EUP) and an eps^2 clamp.
    eps2 = jnp.float32(1e-16)                                  # (1e-8)^2
    cos = dot * lax.rsqrt(jnp.maximum(na2, eps2)) * lax.rsqrt(jnp.maximum(nb2, eps2))

    # COSINE_DISTANCE metric + contrastive loss
    dist = 1.0 - cos                                           # (TB, 1)
    pos = lbl * dist * dist
    neg = (1.0 - lbl) * jnp.square(jnp.maximum(jnp.float32(margin) - dist, 0.0))
    losses = 0.5 * (pos + neg)                                 # (TB, 1)

    def _write(total):
        # Lane-dense, unmasked store of the per-tile partial (all 1024 entries
        # hold the same value; the wrapper reads [:, 0, 0]).
        out_ref[...] = jnp.broadcast_to(jnp.reshape(total, (1, 1, 1)), (1, 8, 128))

    if need_mask:
        # Only the last tile contains out-of-range (garbage) rows; everything is
        # masked with a select (safe even if garbage rows produced NaN/Inf).
        pid = pl.program_id(0)
        last = pl.num_programs(0) - 1

        @pl.when(pid == last)
        def _():
            row = lax.broadcasted_iota(jnp.int32, (tile_b, 1), 0)
            _write(jnp.sum(jnp.where(row < rows_in_last, losses, 0.0)))

        @pl.when(pid != last)
        def _():
            _write(jnp.sum(losses))
    else:
        _write(jnp.sum(losses))


def _device_config():
    """Return (vmem_limit_bytes, multi_tensorcore) for the local accelerator."""
    try:
        kind = jax.devices()[0].device_kind.lower()
    except Exception:
        kind = ""
    if ("v4" in kind) or ("v5" in kind) or ("v6" in kind):
        # 128 MiB physical VMEM per (mega)core; default scoped limit is far lower.
        return 96 * 1024 * 1024, False
    if ("v2" in kind) or ("v3" in kind):
        return 12 * 1024 * 1024, False
    # v7x (64 MiB VMEM per TensorCore, 2 TCs/chip) or unknown: stay conservative.
    return 48 * 1024 * 1024, ("tpu" in kind and "7" in kind)


def _pick_tile_b(batch, hidden, in_itemsize, vmem_limit):
    # Budget: 2 input arrays x 2 pipeline buffers in the native dtype plus
    # ~5 f32 tile temporaries (upcasts + three elementwise products), kept
    # within ~70% of the requested VMEM limit. Lane padding to 128 accounted.
    d_pad = ((hidden + 127) // 128) * 128
    budget = int(vmem_limit * 0.70)
    per_row = d_pad * (4 * in_itemsize + 5 * 4)
    tb = budget // max(per_row, 1)
    tb = max(8, min((tb // 8) * 8, 8192))
    return min(tb, ((batch + 7) // 8) * 8)


def contrastive_loss(rep_anchor, rep_other, labels, *, margin=0.5,
                     size_average=True, tile_b=None):
    """labels: (B,) with 1 = same class, 0 = different class."""
    B, D = rep_anchor.shape
    assert rep_other.shape == (B, D)
    assert labels.shape[0] == B

    vmem_limit, multi_tc = _device_config()
    in_itemsize = max(jnp.dtype(rep_anchor.dtype).itemsize,
                      jnp.dtype(rep_other.dtype).itemsize)

    if tile_b is None:
        tb = _pick_tile_b(B, D, in_itemsize, vmem_limit)
    else:
        tb = max(8, (int(tile_b) // 8) * 8)
        tb = min(tb, ((B + 7) // 8) * 8)

    num_tiles = -(-B // tb)                      # cdiv; last block may be partial
    rows_in_last = B - (num_tiles - 1) * tb      # valid rows in the last block
    need_mask = rows_in_last != tb

    # No padding of the (B, D) embeddings — partial last block + in-kernel mask.
    labels2d = labels.astype(jnp.float32).reshape(B, 1)

    kernel = functools.partial(
        _contrastive_partial_kernel,
        margin=float(margin), tile_b=tb,
        rows_in_last=rows_in_last, need_mask=need_mask,
    )

    # On v7x, split the batch tiles across the two TensorCores.
    sem = pltpu.PARALLEL
    if multi_tc and num_tiles >= 2 and hasattr(pltpu, "CORE_PARALLEL"):
        sem = pltpu.CORE_PARALLEL

    partials = pl.pallas_call(
        kernel,
        out_shape=jax.ShapeDtypeStruct((num_tiles, 8, 128), jnp.float32),
        grid=(num_tiles,),
        in_specs=[
            pl.BlockSpec((tb, D), lambda i: (i, 0)),
            pl.BlockSpec((tb, D), lambda i: (i, 0)),
            pl.BlockSpec((tb, 1), lambda i: (i, 0)),
        ],
        out_specs=pl.BlockSpec((1, 8, 128), lambda i: (i, 0, 0)),
        compiler_params=pltpu.CompilerParams(
            dimension_semantics=(sem,),
            vmem_limit_bytes=vmem_limit,
        ),
    )(rep_anchor, rep_other, labels2d)

    total = jnp.sum(partials[:, 0, 0])
    if size_average:
        total = total / jnp.float32(B)
    return total


def _reference(rep_anchor, rep_other, labels, margin=0.5, size_average=True):
    a = rep_anchor.astype(jnp.float32)
    b = rep_other.astype(jnp.float32)
    eps = 1e-8
    cos = jnp.sum(a * b, -1) / (
        jnp.maximum(jnp.linalg.norm(a, axis=-1), eps)
        * jnp.maximum(jnp.linalg.norm(b, axis=-1), eps)
    )
    dist = 1.0 - cos
    lbl = labels.astype(jnp.float32)
    losses = 0.5 * (lbl * dist**2 + (1 - lbl) * jnp.maximum(margin - dist, 0.0) ** 2)
    return jnp.mean(losses) if size_average else jnp.sum(losses)


if __name__ == "__main__":
    key = jax.random.PRNGKey(0)
    k1, k2, k3, k4, k5, k6 = jax.random.split(key, 6)

    # small, module-consistent shapes: batch of sentence pairs x embedding dim
    B, D = 8, 32
    rep_anchor = jax.random.normal(k1, (B, D), dtype=jnp.float32)
    rep_other = jax.random.normal(k2, (B, D), dtype=jnp.float32)
    labels = (jax.random.uniform(k3, (B,)) > 0.5).astype(jnp.int32)

    loss = contrastive_loss(rep_anchor, rep_other, labels, margin=0.5, size_average=True)
    loss = jax.block_until_ready(loss)
    ref = _reference(rep_anchor, rep_other, labels)
    assert jnp.allclose(loss, ref, atol=1e-5, rtol=1e-4), (loss, ref)

    # second check: bf16 embeddings, batch not a multiple of the tile (exercises
    # the multi-tile grid + partial last block + masked-row path with no padding)
    B2, D2 = 200, 256
    a2 = jax.random.normal(k4, (B2, D2), dtype=jnp.bfloat16)
    b2 = jax.random.normal(k5, (B2, D2), dtype=jnp.bfloat16)
    l2 = (jax.random.uniform(k6, (B2,)) > 0.5).astype(jnp.int32)

    loss2 = contrastive_loss(a2, b2, l2, margin=0.5, size_average=True, tile_b=64)
    loss2 = jax.block_until_ready(loss2)
    ref2 = _reference(a2, b2, l2)
    assert jnp.allclose(loss2, ref2, atol=1e-5, rtol=1e-4), (loss2, ref2)

    print("KERNEL_OK")
</pallas_src>

<mosaic_0001>
module attributes {stable_mosaic.version = 11 : i64} {
  func.func @_contrastive_partial_kernel(%arg0: i32, %arg1: memref<8x32xf32, #tpu.memory_space<vmem>>, %arg2: memref<8x32xf32, #tpu.memory_space<vmem>>, %arg3: memref<8x1xf32, #tpu.memory_space<vmem>>, %arg4: memref<1x8x128xf32, #tpu.memory_space<vmem>>) attributes {dimension_semantics = [#tpu.dimension_semantics<parallel>], iteration_bounds = array<i64: 1>, scalar_prefetch = 0 : i64, scratch_operands = 0 : i64, tpu.core_type = #tpu.core_type<tc>, window_params = [{transform_indices = @transform_0, window_bounds = array<i64: 8, 32>}, {transform_indices = @transform_1, window_bounds = array<i64: 8, 32>}, {transform_indices = @transform_2, window_bounds = array<i64: 8, 1>}, {transform_indices = @transform_3, window_bounds = array<i64: 1, 8, 128>}]} {
    %c0 = arith.constant 0 : index
    %c0_0 = arith.constant 0 : index
    %0 = vector.load %arg1[%c0, %c0_0] : memref<8x32xf32, #tpu.memory_space<vmem>>, vector<8x32xf32>
    %c0_1 = arith.constant 0 : index
    %c0_2 = arith.constant 0 : index
    %1 = vector.load %arg2[%c0_1, %c0_2] : memref<8x32xf32, #tpu.memory_space<vmem>>, vector<8x32xf32>
    %c0_3 = arith.constant 0 : index
    %c0_4 = arith.constant 0 : index
    %2 = vector.load %arg3[%c0_3, %c0_4] : memref<8x1xf32, #tpu.memory_space<vmem>>, vector<8x1xf32>
    %cst = arith.constant 1.000000e+00 : f32
    %3 = vector.broadcast %cst : f32 to vector<32x1xf32>
    %4 = arith.mulf %0, %1 : vector<8x32xf32>
    %cst_5 = arith.constant dense<0.000000e+00> : vector<8x1xf32>
    %5 = tpu.matmul %4, %3, %cst_5 {dimension_numbers = #tpu.dot_dimension_numbers<[1], [0], [0], [1], [0, 0, 1, 1], [], []>, precision = #tpu.contract_precision<fp32>} : vector<8x32xf32>, vector<32x1xf32>, vector<8x1xf32> -> vector<8x1xf32>
    %6 = arith.mulf %0, %0 : vector<8x32xf32>
    %cst_6 = arith.constant dense<0.000000e+00> : vector<8x1xf32>
    %7 = tpu.matmul %6, %3, %cst_6 {dimension_numbers = #tpu.dot_dimension_numbers<[1], [0], [0], [1], [0, 0, 1, 1], [], []>, precision = #tpu.contract_precision<fp32>} : vector<8x32xf32>, vector<32x1xf32>, vector<8x1xf32> -> vector<8x1xf32>
    %8 = arith.mulf %1, %1 : vector<8x32xf32>
    %cst_7 = arith.constant dense<0.000000e+00> : vector<8x1xf32>
    %9 = tpu.matmul %8, %3, %cst_7 {dimension_numbers = #tpu.dot_dimension_numbers<[1], [0], [0], [1], [0, 0, 1, 1], [], []>, precision = #tpu.contract_precision<fp32>} : vector<8x32xf32>, vector<32x1xf32>, vector<8x1xf32> -> vector<8x1xf32>
    %cst_8 = arith.constant 1.000000e-16 : f32
    %10 = vector.broadcast %cst_8 : f32 to vector<8x1xf32>
    %11 = arith.maximumf %7, %10 : vector<8x1xf32>
    %12 = math.rsqrt %11 : vector<8x1xf32>
    %13 = arith.mulf %5, %12 : vector<8x1xf32>
    %cst_9 = arith.constant 1.000000e-16 : f32
    %14 = vector.broadcast %cst_9 : f32 to vector<8x1xf32>
    %15 = arith.maximumf %9, %14 : vector<8x1xf32>
    %16 = math.rsqrt %15 : vector<8x1xf32>
    %17 = arith.mulf %13, %16 : vector<8x1xf32>
    %cst_10 = arith.constant 1.000000e+00 : f32
    %18 = vector.broadcast %cst_10 : f32 to vector<8x1xf32>
    %19 = arith.subf %18, %17 : vector<8x1xf32>
    %20 = arith.mulf %2, %19 : vector<8x1xf32>
    %21 = arith.mulf %20, %19 : vector<8x1xf32>
    %cst_11 = arith.constant 1.000000e+00 : f32
    %22 = vector.broadcast %cst_11 : f32 to vector<8x1xf32>
    %23 = arith.subf %22, %2 : vector<8x1xf32>
    %cst_12 = arith.constant 5.000000e-01 : f32
    %24 = vector.broadcast %cst_12 : f32 to vector<8x1xf32>
    %25 = arith.subf %24, %19 : vector<8x1xf32>
    %cst_13 = arith.constant 0.000000e+00 : f32
    %26 = vector.broadcast %cst_13 : f32 to vector<8x1xf32>
    %27 = arith.maximumf %25, %26 : vector<8x1xf32>
    %28 = arith.mulf %27, %27 : vector<8x1xf32>
    %29 = arith.mulf %23, %28 : vector<8x1xf32>
    %30 = arith.addf %21, %29 : vector<8x1xf32>
    %cst_14 = arith.constant 5.000000e-01 : f32
    %31 = vector.broadcast %cst_14 : f32 to vector<8x1xf32>
    %32 = arith.mulf %31, %30 : vector<8x1xf32>
    %33 = vector.shape_cast %32 : vector<8x1xf32> to vector<1x8x1xf32>
    %cst_15 = arith.constant dense<0.000000e+00> : vector<1xf32>
    %34 = vector.multi_reduction <add>, %33, %cst_15 [1, 2] : vector<1x8x1xf32> to vector<1xf32>
    %35 = vector.shape_cast %34 : vector<1xf32> to vector<1x1x1xf32>
    %36 = vector.extract %35[0, 0, 0] : f32 from vector<1x1x1xf32>
    %37 = vector.broadcast %36 : f32 to vector<1x1x1xf32>
    %38 = vector.shape_cast %37 : vector<1x1x1xf32> to vector<1x1x1xf32>
    %39 = vector.broadcast %38 : vector<1x1x1xf32> to vector<1x8x128xf32>
    %c0_16 = arith.constant 0 : index
    %c0_17 = arith.constant 0 : index
    %c0_18 = arith.constant 0 : index
    %40 = vector.load %arg4[%c0_16, %c0_17, %c0_18] : memref<1x8x128xf32, #tpu.memory_space<vmem>>, vector<1x8x128xf32>
    tpu.vector_store %arg4[%c0_16, %c0_17, %c0_18], %39 {strides = array<i32>} : memref<1x8x128xf32, #tpu.memory_space<vmem>>, vector<1x8x128xf32>,
    return
  }
  func.func @transform_0(%arg0: i32) -> (i32, i32) {
    %c0_i32 = arith.constant 0 : i32
    %c0_i32_0 = arith.constant 0 : i32
    return %arg0, %c0_i32 : i32, i32
  }
  func.func @transform_1(%arg0: i32) -> (i32, i32) {
    %c0_i32 = arith.constant 0 : i32
    %c0_i32_0 = arith.constant 0 : i32
    return %arg0, %c0_i32 : i32, i32
  }
  func.func @transform_2(%arg0: i32) -> (i32, i32) {
    %c0_i32 = arith.constant 0 : i32
    %c0_i32_0 = arith.constant 0 : i32
    return %arg0, %c0_i32 : i32, i32
  }
  func.func @transform_3(%arg0: i32) -> (i32, i32, i32) {
    %c0_i32 = arith.constant 0 : i32
    %c0_i32_0 = arith.constant 0 : i32
    %c0_i32_1 = arith.constant 0 : i32
    return %arg0, %c0_i32, %c0_i32_0 : i32, i32, i32
  }
}

</mosaic_0001>

<bundles_post_ra>
// kernel: tpu_custom_call.1
= control target key start
LH: loop header
LB: loop body
LE: loop exit
PB: predicated region body
PF: predicated region fallthrough
CT: control target
= control target key end

     0   :  { %8 = vsyncpa [#allocation3], 0  ;;  %s1831_s0 = inlined_call_operand.vmem [shape: f32[8,32], index: 0, kind: input, shape index: {}]   ;;  %s1832_s1 = inlined_call_operand.hbm [shape: f32[8,32], index: 1, kind: input, shape index: {}]   ;;  %s1833_s2 = inlined_call_operand.vmem [shape: f32[8,1], index: 2, kind: input, shape index: {}]   ;;  %s1834_s3 = inlined_call_operand.hbm [shape: f32[1,8,128], index: 3, kind: output, shape index: {}]  }
   0x1   :  { %9 = vsyncpa [#allocation4], 0  ;;  %s1648_s12 = smov [#allocation2]  }
   0x2   :  { %s18_s13 = sshll.u32 %s1648_s12, 4  ;;  %s19_s13 = int_to_ptr.vmem [resolvable:$true] %s18_s13 }
   0x3   :  { %s1612_s14 = scalar_lea.vmem %s19_s13, 128  ;;  %p1617_p1 = scmp.lt.s32.totalorder %s19_s13, %s19_s13 }
   0x4   :  { %p1613_p0 = scmp.ne.s32.totalorder %s19_s13, %s1612_s14  ;;  %p1618_p2 = scmp.lt.s32.totalorder %s1612_s14, %s1612_s14 }
   0x6   :  { %p1619_p3 = por %p1618_p2, %p1617_p1 }
   0x8   :  { %p1620_p4 = pnand %p1619_p3, %p1613_p0 }
   0xa   :  { %1623 = shalt.err (!%p1620_p4)
}
   0xb   :  { %21 = dma.hbm_to_vmem [thread:$0]  %s1832_s1, 128, %s19_s13, [#allocation3]  }
   0xc   :  { %1644 = dma.done.wait [#allocation3], 128  }
   0xd   :  { %1645 = vsyncadd [#allocation3], 4294967168  ;;  %v1649_v0 = vmov 0.0   ;;  %vm1650_vm0 = vmmov 0   ;;  %v1651_v1 = vmov 1.0   ;;  %v27_v2 = vld [vmem:[%s1831_s0] sm:$0xff] }
   0xe   :  { %1460 = vmatprep.subr.mxu1 %v1649_v0  ;;  %1462 = vmatprep.mubr.msk.f32.mxu1 %vm1650_vm0, %v1649_v0  ;;  %v28_v3 = vld [vmem:[#allocation2] sm:$0xff]  ;;  %vm31_vm1 = vcmask 261120   ;;  %v468_v7 = vmul.f32 %v27_v2, %v27_v2  ;;  %vm1358_vm2 = vcmask 7168  }
   0xf   :  { %1461 = vmatpush3.msra.mxu1 %v1649_v0  ;;  %1449 = vmatprep.subr.mxu0 %v1649_v0  ;;  %v30_v4 = vmul.f32 %v28_v3, %v27_v2  ;;  %v905_v16 = vmul.f32 %v28_v3, %v28_v3 }
  0x10   :  { %1465 = vmatprep.subr.mxu1 %v1649_v0  ;;  %1450 = vmatpush3.msra.mxu0 %v1651_v1  ;;  %v470_v10 = vsel %vm31_vm1, %v468_v7, 0 }
  0x11   :  { %1451 = vmatprep.subr.mxu0 %v1649_v0  ;;  %1457 = vmatprep.mubr.msk.f32.mxu0 %vm1650_vm0, %v1649_v0  ;;  %v33_v5 = vsel %vm31_vm1, %v30_v4, 0  ;;  %v1704_v12 = vand.u32 4294901760, %v470_v10  ;;  %v907_v18 = vsel %vm31_vm1, %v905_v16, 0 }
  0x12   :  { %1452 = vmatpush3.msra.mxu0 %v1651_v1  ;;  %v100_v6 = vand.u32 4294901760, %v33_v5  ;;  %v1737_v20 = vand.u32 4294901760, %v907_v18 }
  0x13   :  { %1453 = vmatprep.subr.mxu0 %v1649_v0  ;;  %v538_v14 = vsub.f32 %v470_v10, %v1704_v12 }
  0x14   :  { %1454 = vmatpush3.msra.mxu0 %v1651_v1  ;;  %1463 = vmatmul.mubr.f32.vlgmr.msra.gmra.mxu1 %v100_v6  ;;  %v101_v8 = vsub.f32 %v33_v5, %v100_v6  ;;  %v1750_v21 = vsub.f32 %v907_v18, %v1737_v20 }
  0x15   :  { %1455 = vmatprep.subr.mxu0 %v1649_v0  ;;  %1466 = vmatpush3.msra.mxu1 %v1649_v0  ;;  %v539_v15 = vand.u32 4294901760, %v538_v14 }
  0x16   :  { %1456 = vmatpush3.msra.mxu0 %v1651_v1  ;;  %1467 = vmatprep.mubr.msk.f32.mxu1 %vm1650_vm0, %v1649_v0  ;;  %v102_v9 = vand.u32 4294901760, %v101_v8  ;;  %v976_v22 = vand.u32 4294901760, %v1750_v21 }
  0x17   :  { %1486 = vmatprep.subr.mxu0 %v1649_v0  ;;  %1470 = vmatprep.subr.mxu1 %v1649_v0  ;;  %v540_v17 = vsub.f32 %v538_v14, %v539_v15 }
  0x18   :  { %1468 = vmatmul.mubr.f32.vlgmr.msra.gmra.mxu1 %v101_v8  ;;  %v103_v11 = vsub.f32 %v101_v8, %v102_v9  ;;  %v977_v23 = vsub.f32 %v1750_v21, %v976_v22 }
  0x19   :  { %1471 = vmatpush3.msra.mxu1 %v1651_v1  ;;  %1478 = vmatprep.mubr.msk.f32.mxu1 %vm1650_vm0, %v1649_v0  ;;  %v541_v19 = vand.u32 4294901760, %v540_v17 }
  0x1a   :  { %1472 = vmatprep.subr.mxu1 %v1649_v0  ;;  %v104_v13 = vand.u32 4294901760, %v103_v11  ;;  %v978_v24 = vand.u32 4294901760, %v977_v23 }
  0x1b   :  { %1473 = vmatpush3.msra.mxu1 %v1651_v1 }
  0x1c   :  { %1474 = vmatprep.subr.mxu1 %v1649_v0  ;;  %1458 = vmatmul.mubr.f32.vlgmr.msra.gmra.mxu0 %v104_v13 }
  0x1d   :  { %1475 = vmatpush3.msra.mxu1 %v1651_v1  ;;  %1487 = vmatpush3.msra.mxu0 %v1651_v1 }
  0x1e   :  { %1476 = vmatprep.subr.mxu1 %v1649_v0  ;;  %1488 = vmatprep.subr.mxu0 %v1649_v0 }
  0x1f   :  { %1477 = vmatpush3.msra.mxu1 %v1651_v1  ;;  %1489 = vmatpush3.msra.mxu0 %v1651_v1 }
  0x20   :  { %1479 = vmatmul.mubr.f32.vlgmr.msra.gmra.mxu1 %v102_v9  ;;  %1481 = vmatprep.subr.mxu1 %v1649_v0 }
  0x21   :  { %1482 = vmatpush3.msra.mxu1 %v1649_v0  ;;  %1490 = vmatprep.subr.mxu0 %v1649_v0 }
  0x22   :  { %1491 = vmatpush3.msra.mxu0 %v1651_v1  ;;  %1483 = vmatprep.mubr.msk.f32.mxu1 %vm1650_vm0, %v1649_v0 }
  0x23   :  { %1492 = vmatprep.subr.mxu0 %v1649_v0  ;;  %1497 = vmatprep.subr.mxu1 %v1649_v0 }
  0x24   :  { %1484 = vmatmul.mubr.f32.vlgmr.msra.gmra.mxu1 %v100_v6  ;;  %1493 = vmatpush3.msra.mxu0 %v1651_v1 }
  0x25   :  { %1494 = vmatprep.mubr.msk.f32.mxu0 %vm1650_vm0, %v1649_v0  ;;  %1498 = vmatpush3.msra.mxu1 %v1651_v1 }
  0x26   :  { %1495 = vmatmul.mubr.f32.vlgmr.msra.gmra.mxu0 %v100_v6  ;;  %1499 = vmatprep.subr.mxu1 %v1649_v0 }
  0x27   :  { %1500 = vmatpush3.msra.mxu1 %v1651_v1  ;;  %1508 = vmatprep.subr.mxu0 %v1649_v0 }
  0x28   :  { %1501 = vmatprep.subr.mxu1 %v1649_v0  ;;  %1509 = vmatpush3.msra.mxu0 %v1649_v0 }
  0x29   :  { %1502 = vmatpush3.msra.mxu1 %v1651_v1  ;;  %1510 = vmatprep.mubr.msk.f32.mxu0 %vm1650_vm0, %v1649_v0 }
  0x2a   :  { %1503 = vmatprep.subr.mxu1 %v1649_v0  ;;  %1511 = vmatmul.mubr.f32.vlgmr.msra.gmra.mxu0 %v1704_v12 }
  0x2b   :  { %1518 = vmatprep.subr.mxu0 %v1649_v0  ;;  %1504 = vmatpush3.msra.mxu1 %v1651_v1 }
  0x2c   :  { %1505 = vmatprep.mubr.msk.f32.mxu1 %vm1650_vm0, %v1649_v0  ;;  %1519 = vmatpush3.msra.mxu0 %v1651_v1 }
  0x2d   :  { %1506 = vmatmul.mubr.f32.vlgmr.msra.gmra.mxu1 %v541_v19  ;;  %1513 = vmatprep.subr.mxu1 %v1649_v0  ;;  %v29_v19 = vld [vmem:[%s1833_s2] sm:$0xff]  ;;  %s1652_s2 = smov [#allocation5]  }
  0x2e   :  { %1520 = vmatprep.subr.mxu0 %v1649_v0  ;;  %1514 = vmatpush3.msra.mxu1 %v1649_v0  ;;  %s1377_s19 = sshll.u32 %s1652_s2, 4  ;;  %s1378_s19 = int_to_ptr.vmem [resolvable:$true] %s1377_s19 }
  0x2f   :  { %1521 = vmatpush3.msra.mxu0 %v1651_v1  ;;  %1515 = vmatprep.mubr.msk.f32.mxu1 %vm1650_vm0, %v1649_v0  ;;  %s1624_s21 = scalar_lea.vmem %s1378_s19, 128  ;;  %p1629_p6 = scmp.lt.s32.totalorder %s1378_s19, %s1378_s19 }
  0x30   :  { %1522 = vmatprep.subr.mxu0 %v1649_v0  ;;  %1529 = vmatprep.subr.mxu1 %v1649_v0  ;;  %p1625_p5 = scmp.ne.s32.totalorder %s1378_s19, %s1624_s21  ;;  %p1630_p7 = scmp.lt.s32.totalorder %s1624_s21, %s1624_s21 }
  0x31   :  { %1523 = vmatpush3.msra.mxu0 %v1651_v1  ;;  %1516 = vmatmul.mubr.f32.vlgmr.msra.gmra.mxu1 %v538_v14 }
  0x32   :  { %1524 = vmatprep.subr.mxu0 %v1649_v0  ;;  %1526 = vmatprep.mubr.msk.f32.mxu0 %vm1650_vm0, %v1649_v0  ;;  %p1631_p8 = por %p1630_p7, %p1629_p6 }
  0x33   :  { %1525 = vmatpush3.msra.mxu0 %v1651_v1  ;;  %1530 = vmatpush3.msra.mxu1 %v1649_v0 }
  0x34   :  { %1527 = vmatmul.mubr.f32.vlgmr.msra.gmra.mxu0 %v539_v15  ;;  %1545 = vmatprep.subr.mxu0 %v1649_v0  ;;  %p1632_p9 = pnand %p1631_p8, %p1625_p5 }
  0x35   :  { %1531 = vmatprep.mubr.msk.f32.mxu1 %vm1650_vm0, %v1649_v0  ;;  %1534 = vmatprep.subr.mxu1 %v1649_v0 }
  0x36   :  { %1546 = vmatpush3.msra.mxu0 %v1651_v1  ;;  %1532 = vmatmul.mubr.f32.vlgmr.msra.gmra.mxu1 %v1704_v12 }
  0x37   :  { %1535 = vmatpush3.msra.mxu1 %v1651_v1  ;;  %1547 = vmatprep.subr.mxu0 %v1649_v0 }
  0x38   :  { %1536 = vmatprep.subr.mxu1 %v1649_v0  ;;  %1548 = vmatpush3.msra.mxu0 %v1651_v1 }
  0x39   :  { %1537 = vmatpush3.msra.mxu1 %v1651_v1  ;;  %1549 = vmatprep.subr.mxu0 %v1649_v0 }
  0x3a   :  { %1538 = vmatprep.subr.mxu1 %v1649_v0  ;;  %1550 = vmatpush3.msra.mxu0 %v1651_v1 }
  0x3b   :  { %1539 = vmatpush3.msra.mxu1 %v1651_v1  ;;  %1551 = vmatprep.subr.mxu0 %v1649_v0 }
  0x3c   :  { %1540 = vmatprep.subr.mxu1 %v1649_v0  ;;  %1552 = vmatpush3.msra.mxu0 %v1651_v1 }
  0x3d   :  { %1553 = vmatprep.mubr.msk.f32.mxu0 %vm1650_vm0, %v1649_v0  ;;  %1541 = vmatpush3.msra.mxu1 %v1651_v1 }
  0x3e   :  { %1542 = vmatprep.mubr.msk.f32.mxu1 %vm1650_vm0, %v1649_v0  ;;  %1554 = vmatmul.mubr.f32.vlgmr.msra.gmra.mxu0 %v978_v24 }
  0x3f   :  { %1543 = vmatmul.mubr.f32.vlgmr.msra.gmra.mxu1 %v1704_v12  ;;  %1556 = vmatprep.subr.mxu1 %v1649_v0 }
  0x40   :  { %1561 = vmatprep.subr.mxu0 %v1649_v0  ;;  %1557 = vmatpush3.msra.mxu1 %v1649_v0 }
  0x41   :  { %1562 = vmatpush3.msra.mxu0 %v1649_v0  ;;  %1563 = vmatprep.mubr.msk.f32.mxu0 %vm1650_vm0, %v1649_v0 }
  0x42   :  { %1558 = vmatprep.mubr.msk.f32.mxu1 %vm1650_vm0, %v1649_v0  ;;  %1564 = vmatmul.mubr.f32.vlgmr.msra.gmra.mxu0 %v1750_v21 }
  0x43   :  { %1566 = vmatprep.subr.mxu1 %v1649_v0  ;;  %1559 = vmatmul.mubr.f32.vlgmr.msra.gmra.mxu1 %v1737_v20 }
  0x44   :  { %1567 = vmatpush3.msra.mxu1 %v1651_v1  ;;  %1577 = vmatprep.subr.mxu0 %v1649_v0 }
  0x45   :  { %1568 = vmatprep.subr.mxu1 %v1649_v0  ;;  %1578 = vmatpush3.msra.mxu0 %v1649_v0 }
  0x46   :  { %1569 = vmatpush3.msra.mxu1 %v1651_v1  ;;  %1579 = vmatprep.mubr.msk.f32.mxu0 %vm1650_vm0, %v1649_v0 }
  0x47   :  { %1582 = vmatprep.subr.mxu0 %v1649_v0  ;;  %1570 = vmatprep.subr.mxu1 %v1649_v0 }
  0x48   :  { %1580 = vmatmul.mubr.f32.vlgmr.msra.gmra.mxu0 %v1737_v20  ;;  %1571 = vmatpush3.msra.mxu1 %v1651_v1 }
  0x49   :  { %1583 = vmatpush3.msra.mxu0 %v1651_v1  ;;  %1572 = vmatprep.subr.mxu1 %v1649_v0 }
  0x4a   :  { %1584 = vmatprep.subr.mxu0 %v1649_v0  ;;  %1573 = vmatpush3.msra.mxu1 %v1651_v1 }
  0x4b   :  { %1585 = vmatpush3.msra.mxu0 %v1651_v1  ;;  %1574 = vmatprep.mubr.msk.f32.mxu1 %vm1650_vm0, %v1649_v0 }
  0x4c   :  { %1586 = vmatprep.subr.mxu0 %v1649_v0  ;;  %1575 = vmatmul.mubr.f32.vlgmr.msra.gmra.mxu1 %v976_v22  ;;  %v1351_v22 = vsub.f32 1.0, %v29_v19 }
  0x4d   :  { %1587 = vmatpush3.msra.mxu0 %v1651_v1  ;;  %1590 = vmatprep.mubr.msk.f32.mxu0 %vm1650_vm0, %v1649_v0 }
  0x4e   :  { %1588 = vmatprep.subr.mxu0 %v1649_v0 }
  0x4f   :  { %1589 = vmatpush3.msra.mxu0 %v1651_v1 }
  0x50   :  { %1591 = vmatmul.mubr.f32.vlgmr.msra.gmra.mxu0 %v1737_v20 }
  0xd4   :  { %v177_v25 = vpop.f32.mrf.mxu1 }
  0xd6   :  { %v1464_v26 = vpop.f32.mrf.mxu1 }
  0xd8   :  { %v249_v27 = vpop.f32.mrf.mxu1 }
  0xda   :  { %v1469_v28 = vpop.f32.mrf.mxu1 }
  0xdc   :  { %v106_v29 = vpop.f32.mrf.mxu0 }
  0xdd   :  { %v178_v30 = vadd.f32 %v177_v25, %v106_v29 }
  0xde   :  { %v1459_v31 = vpop.f32.mrf.mxu0 }
  0xdf   :  { %v250_v32 = vadd.f32 %v249_v27, %v178_v30 }
  0xe0   :  { %v322_v33 = vpop.f32.mrf.mxu1 }
  0xe1   :  { %v323_v11 = vadd.f32 %v322_v33, %v250_v32 }
  0xe2   :  { %v1480_v34 = vpop.f32.mrf.mxu1 }
  0xe4   :  { %v393_v35 = vpop.f32.mrf.mxu1 }
  0xe5   :  { %v394_v12 = vadd.f32 %v393_v35, %v323_v11 }
  0xe6   :  { %v464_v36 = vpop.f32.mrf.mxu0  ;;  %v1485_v37 = vpop.f32.mrf.mxu1 }
  0xe7   :  { %v465_v14 = vadd.f32 %v464_v36, %v394_v12 }
  0xe8   :  { %v1496_v38 = vpop.f32.mrf.mxu0 }
  0xea   :  { %v614_v39 = vpop.f32.mrf.mxu0 }
  0xec   :  { %v1512_v40 = vpop.f32.mrf.mxu0 }
  0xed   :  { %v543_v41 = vpop.f32.mrf.mxu1 }
  0xee   :  { %v615_v49 = vadd.f32 %v614_v39, %v543_v41 }
  0xef   :  { %v1507_v42 = vpop.f32.mrf.mxu1 }
  0xf1   :  { %v686_v43 = vpop.f32.mrf.mxu1 }
  0xf2   :  { %v687_v51 = vadd.f32 %v686_v43, %v615_v49 }
  0xf3   :  { %v1517_v44 = vpop.f32.mrf.mxu1 }
  0xf4   :  { %v759_v45 = vpop.f32.mrf.mxu0 }
  0xf5   :  { %v760_v56 = vadd.f32 %v759_v45, %v687_v51 }
  0xf6   :  { %v1528_v46 = vpop.f32.mrf.mxu0  ;;  %v830_v47 = vpop.f32.mrf.mxu1 }
  0xf7   :  { %v831_v60 = vadd.f32 %v830_v47, %v760_v56 }
  0xf8   :  { %v1533_v48 = vpop.f32.mrf.mxu1 }
  0xfe   :  { %v980_v50 = vpop.f32.mrf.mxu0 }
  0xff   :  { %v901_v52 = vpop.f32.mrf.mxu1 }
 0x100   :  { %v1555_v53 = vpop.f32.mrf.mxu0  ;;  %v902_v63 = vadd.f32 %v901_v52, %v831_v60 }
 0x101   :  { %v1544_v54 = vpop.f32.mrf.mxu1 }
 0x102   :  { %v1123_v55 = vpop.f32.mrf.mxu0  ;;  %v1342_v3 = vmax.f32 %v902_v63, 1e-16 }
 0x103   :  { %v1051_v57 = vpop.f32.mrf.mxu1 }
 0x104   :  { %v1565_v58 = vpop.f32.mrf.mxu0  ;;  %v1052_v61 = vadd.f32 %v1051_v57, %v980_v50  ;;  %1600 = vrsqrt.f32 %v1342_v3 }
 0x105   :  { %v1560_v59 = vpop.f32.mrf.mxu1 }
 0x106   :  { %v1124_v1 = vadd.f32 %v1123_v55, %v1052_v61 }
 0x108   :  { %v1267_v62 = vpop.f32.mrf.mxu0 }
 0x10a   :  { %v1581_v0 = vpop.f32.mrf.mxu0 }
 0x10c   :  { %v1196_v2 = vpop.f32.mrf.mxu1 }
 0x10d   :  { %v1197_v4 = vadd.f32 %v1196_v2, %v1124_v1 }
 0x10e   :  { %v1576_v5 = vpop.f32.mrf.mxu1 }
 0x10f   :  { %v1268_v6 = vadd.f32 %v1267_v62, %v1197_v4 }
 0x110   :  { %v1338_v7 = vpop.f32.mrf.mxu0 }
 0x111   :  { %v1339_v8 = vadd.f32 %v1338_v7, %v1268_v6  ;;  %v1601_v13 = vpop.eup %1600 }
 0x112   :  { %v1592_v9 = vpop.f32.mrf.mxu0  ;;  %v1344_v15 = vmul.f32 %v1601_v13, %v465_v14 }
 0x113   :  { %v1345_v10 = vmax.f32 %v1339_v8, 1e-16 }
 0x115   :  { %1602 = vrsqrt.f32 %v1345_v10 }
 0x122   :  { %v1603_v16 = vpop.eup %1602 }
 0x123   :  { %v1347_v17 = vmul.f32 %v1603_v16, %v1344_v15 }
 0x125   :  { %v1348_v18 = vsub.f32 1.0, %v1347_v17 }
 0x127   :  { %v1352_v20 = vsub.f32 0.5, %v1348_v18  ;;  %v1349_v21 = vmul.f32 %v1348_v18, %v29_v19 }
 0x129   :  { %v1353_v23 = vmax.f32 %v1352_v20, 0.0  ;;  %v1350_v25 = vmul.f32 %v1349_v21, %v1348_v18 }
 0x12b   :  { %v1354_v24 = vmul.f32 %v1353_v23, %v1353_v23 }
 0x12d   :  { %v1355_v26 = vmul.f32 %v1354_v24, %v1351_v22 }
 0x12f   :  { %v1356_v27 = vadd.f32 %v1355_v26, %v1350_v25 }
 0x131   :  { %v1357_v28 = vmul.f32 0.5, %v1356_v27 }
 0x133   :  { %v1359_v29 = vsel %vm1358_vm2, %v1357_v28, 0.0 }
 0x134   :  { %1360 = vadd.xlane.f32.xlu0 %v1359_v29 }
 0x1bd   :  { %v1361_v30 = vpop.xlane.xlu0 %1360 }
 0x1be   :  { %v1362_v31 = vrot.slane %v1361_v30, 4 }
 0x1c0   :  { %v1363_v32 = vadd.f32 %v1362_v31, %v1361_v30 }
 0x1c2   :  { %v1364_v33 = vrot.slane %v1363_v32, 2 }
 0x1c4   :  { %v1365_v34 = vadd.f32 %v1364_v33, %v1363_v32 }
 0x1c6   :  { %v1366_v35 = vrot.slane %v1365_v34, 1 }
 0x1c8   :  { %v1367_v36 = vadd.f32 %v1366_v35, %v1365_v34 }
 0x1ca   :  { %1593 = vpush %v1367_v36 }
 0x1fb   :  { %s1594_s20 = spop %1593 }
 0x1fc   :  { %v1369_v37 = vstv %s1594_s20 }
 0x1fd   :  { %1370 = vst [vmem:[#allocation5] sm:$0xff] %v1369_v37 }
 0x1fe   :  { %1635 = shalt.err (!%p1632_p9)
}
 0x1ff   :  { %1380 = dma.vmem_to_hbm [thread:$0]  %s1378_s19, 128, %s1834_s3, [#allocation4]  }
 0x200   :  { %1646 = dma.done.wait [#allocation4], 128  }
 0x201   :  { %1647 = vsyncadd [#allocation4], 4294967168 }
 0x202   :  { %1384 = vsyncpa [#allocation3], 1 }
 0x203   :  { %1385 = vsyncpa [#allocation4], 1 }

</bundles_post_ra>
